<compile_context>
chip_gen: v5e
topology: v5e:2x2
jax: 0.10.0
libtpu: 0.0.40
codegen_flags: <defaults>
</compile_context>

<pallas_src>
import functools
import math

import jax
import jax.numpy as jnp
import numpy as np
from jax.experimental import pallas as pl
from jax.experimental.pallas import tpu as pltpu


# ----------------------------------------------------------------------------- helpers

def _zero_index_map(ndim):
    return lambda i: (0,) * ndim


def _call_full(kernel, out_shape, *inputs):
    """Run a kernel with whole-array blocks (grid=(1,)). Used only for tiny tensors.
    TODO(synk): at production token counts these would get a pipelined grid over rows."""
    in_specs = [pl.BlockSpec(x.shape, _zero_index_map(x.ndim)) for x in inputs]
    out_specs = pl.BlockSpec(out_shape.shape, _zero_index_map(len(out_shape.shape)))
    return pl.pallas_call(
        kernel,
        out_shape=out_shape,
        grid=(1,),
        in_specs=in_specs,
        out_specs=out_specs,
    )(*inputs)


def _ln(x, g, b, eps):
    mu = jnp.mean(x, axis=-1, keepdims=True)
    var = jnp.mean((x - mu) ** 2, axis=-1, keepdims=True)
    return (x - mu) * jax.lax.rsqrt(var + eps) * g + b


# ----------------------------------------------------------------------- fused BERT layer

def _bert_layer_kernel(x_ref, mask_ref, wqkv_ref, bqkv_ref, wo_ref, bo_ref,
                       ln1g_ref, ln1b_ref, wi_ref, bi_ref, wo2_ref, bo2_ref,
                       ln2g_ref, ln2b_ref, o_ref, *, num_heads, eps):
    x = x_ref[0]                                        # (S, H), stays in VMEM for whole layer
    H = x.shape[-1]
    Dh = H // num_heads
    scale = 1.0 / math.sqrt(Dh)

    # fused QKV projection: one [H, 3H] matmul instead of three.
    qkv = jnp.dot(x, wqkv_ref[...], preferred_element_type=jnp.float32) + bqkv_ref[...]
    q = qkv[:, :H]
    k = qkv[:, H:2 * H]
    v = qkv[:, 2 * H:]

    # additive mask bias built in-kernel from the (1, S) mask row (no HBM bias tensor).
    bias = (1.0 - mask_ref[0]) * -10000.0               # (1, S) -> broadcasts over query rows

    wo = wo_ref[...]
    # residual + attention-output bias; each head is folded back through its slice of wo,
    # so the stored tensor is always the lane-dense (S, H) layout.
    acc = x + bo_ref[...]
    for h in range(num_heads):                          # static unroll; plain 2-D MXU dots
        qh = q[:, h * Dh:(h + 1) * Dh]
        kh = k[:, h * Dh:(h + 1) * Dh]
        vh = v[:, h * Dh:(h + 1) * Dh]
        s = jax.lax.dot_general(qh, kh, (((1,), (1,)), ((), ())),
                                preferred_element_type=jnp.float32) * scale
        s = s + bias
        m = jnp.max(s, axis=-1, keepdims=True)
        p = jnp.exp(s - m)
        p = p / jnp.sum(p, axis=-1, keepdims=True)
        ctx = jnp.dot(p, vh, preferred_element_type=jnp.float32)             # (S, Dh)
        acc = acc + jnp.dot(ctx, wo[h * Dh:(h + 1) * Dh, :],
                            preferred_element_type=jnp.float32)

    h1 = _ln(acc, ln1g_ref[...], ln1b_ref[...], eps)

    inter = jnp.dot(h1, wi_ref[...], preferred_element_type=jnp.float32) + bi_ref[...]
    # TODO(synk): HF BERT uses exact erf-GELU; tanh approximation used here.
    inter = jax.nn.gelu(inter, approximate=True)
    ffn = jnp.dot(inter, wo2_ref[...], preferred_element_type=jnp.float32) + bo2_ref[...]
    o_ref[0] = _ln(ffn + h1, ln2g_ref[...], ln2b_ref[...], eps)


def bert_layer(lp, cfg, x, attention_mask):
    """x: (B, S, H); attention_mask: (B, S) with 1/0. One fused kernel, grid over batch."""
    B, S, H = x.shape
    I = lp["wi"].shape[1]
    mask3 = attention_mask.reshape(B, 1, S).astype(jnp.float32)
    kern = functools.partial(_bert_layer_kernel, num_heads=cfg["heads"], eps=1e-12)

    def full(shape):
        return pl.BlockSpec(shape, lambda b: (0,) * len(shape))

    return pl.pallas_call(
        kern,
        out_shape=jax.ShapeDtypeStruct((B, S, H), jnp.float32),
        grid=(B,),
        in_specs=[
            pl.BlockSpec((1, S, H), lambda b: (b, 0, 0)),
            pl.BlockSpec((1, 1, S), lambda b: (b, 0, 0)),
            full((H, 3 * H)), full((1, 3 * H)),
            full((H, H)), full((1, H)),
            full((1, H)), full((1, H)),
            full((H, I)), full((1, I)),
            full((I, H)), full((1, H)),
            full((1, H)), full((1, H)),
        ],
        out_specs=pl.BlockSpec((1, S, H), lambda b: (b, 0, 0)),
        compiler_params=pltpu.CompilerParams(dimension_semantics=("parallel",)),
    )(x, mask3,
      lp["wqkv"], lp["bqkv"].reshape(1, 3 * H),
      lp["wo"], lp["bo"].reshape(1, H),
      lp["ln1_g"].reshape(1, H), lp["ln1_b"].reshape(1, H),
      lp["wi"], lp["bi"].reshape(1, I),
      lp["wo2"], lp["bo2"].reshape(1, H),
      lp["ln2_g"].reshape(1, H), lp["ln2_b"].reshape(1, H))


# --------------------------------------------------------------------------- small kernels

def _layernorm_kernel(x_ref, g_ref, b_ref, o_ref, *, eps):
    o_ref[...] = _ln(x_ref[...], g_ref[...], b_ref[...], eps)


def layernorm(x, gamma, beta, eps=1e-12):
    h = x.shape[-1]
    kern = functools.partial(_layernorm_kernel, eps=eps)
    return _call_full(kern, jax.ShapeDtypeStruct(x.shape, jnp.float32),
                      x, gamma.reshape(1, h), beta.reshape(1, h))


def _mlm_transform_kernel(x_ref, w_ref, b_ref, g_ref, bb_ref, o_ref, *, eps):
    h = jnp.dot(x_ref[...], w_ref[...], preferred_element_type=jnp.float32) + b_ref[...]
    # TODO(synk): HF BERT uses exact erf-GELU; tanh approximation used here.
    h = jax.nn.gelu(h, approximate=True)
    o_ref[...] = _ln(h, g_ref[...], bb_ref[...], eps)


def mlm_transform(x, w, b, g, bb, eps=1e-12):
    H = w.shape[1]
    kern = functools.partial(_mlm_transform_kernel, eps=eps)
    return _call_full(kern, jax.ShapeDtypeStruct((x.shape[0], H), jnp.float32),
                      x, w, b.reshape(1, H), g.reshape(1, H), bb.reshape(1, H))


def _dense_l2norm_kernel(x_ref, w_ref, b_ref, o_ref):
    y = jnp.dot(x_ref[...], w_ref[...], preferred_element_type=jnp.float32) + b_ref[...]
    norm = jnp.sqrt(jnp.sum(y * y, axis=-1, keepdims=True))
    o_ref[...] = y / jnp.maximum(norm, 1e-12)       # matches torch.nn.functional.normalize


def dense_l2norm(x, w, b):
    n = w.shape[1]
    return _call_full(_dense_l2norm_kernel,
                      jax.ShapeDtypeStruct((x.shape[0], n), jnp.float32),
                      x, w, b.reshape(1, n))


# ------------------------------------------ fused MLM decoder + cross-entropy (vocab-tiled)

def _mlm_decode_loss_kernel(h_ref, labels_ref, w_ref, b_ref, o_ref,
                            m_sc, l_sc, p_sc, *, tile_v):
    j = pl.program_id(0)

    @pl.when(j == 0)
    def _():
        m_sc[...] = jnp.full_like(m_sc, -jnp.inf)
        l_sc[...] = jnp.zeros_like(l_sc)
        p_sc[...] = jnp.zeros_like(p_sc)

    # (T, tile_v) logits for this vocab tile only — never materialized in HBM.
    logits = jnp.dot(h_ref[...], w_ref[...],
                     preferred_element_type=jnp.float32) + b_ref[...]
    labels = labels_ref[...]                                            # (T, 1) int32
    ids = jax.lax.broadcasted_iota(jnp.int32, logits.shape, 1) + j * tile_v
    p_sc[...] += jnp.sum(jnp.where(ids == labels, logits, 0.0), axis=-1, keepdims=True)

    m_new = jnp.maximum(m_sc[...], jnp.max(logits, axis=-1, keepdims=True))
    l_sc[...] = (l_sc[...] * jnp.exp(m_sc[...] - m_new)
                 + jnp.sum(jnp.exp(logits - m_new), axis=-1, keepdims=True))
    m_sc[...] = m_new

    @pl.when(j == pl.num_programs(0) - 1)
    def _():
        lse = m_sc[...] + jnp.log(l_sc[...])
        valid = (labels != -100).astype(jnp.float32)
        num = jnp.sum((lse - p_sc[...]) * valid)
        den = jnp.maximum(jnp.sum(valid), 1.0)
        o_ref[...] = jnp.broadcast_to(num / den, (1, 1))


def mlm_decode_loss(h, labels_flat, dec_w, dec_b, tile_v=128):
    T, H = h.shape
    V = dec_w.shape[1]
    assert V % tile_v == 0
    kern = functools.partial(_mlm_decode_loss_kernel, tile_v=tile_v)
    out = pl.pallas_call(
        kern,
        out_shape=jax.ShapeDtypeStruct((1, 1), jnp.float32),
        grid=(V // tile_v,),
        in_specs=[
            pl.BlockSpec((T, H), lambda j: (0, 0)),
            pl.BlockSpec((T, 1), lambda j: (0, 0)),
            pl.BlockSpec((H, tile_v), lambda j: (0, j)),
            pl.BlockSpec((1, tile_v), lambda j: (0, j)),
        ],
        out_specs=pl.BlockSpec((1, 1), lambda j: (0, 0)),
        scratch_shapes=[pltpu.VMEM((T, 1), jnp.float32),
                        pltpu.VMEM((T, 1), jnp.float32),
                        pltpu.VMEM((T, 1), jnp.float32)],
        compiler_params=pltpu.CompilerParams(dimension_semantics=("arbitrary",)),
    )(h, labels_flat.astype(jnp.int32), dec_w, dec_b.reshape(1, V))
    return out[0, 0]


# --------------------------------------------------------------------- masked block loss

def _block_loss_kernel(pred_ref, lab_ref, o_ref):
    p = pred_ref[...]        # (M, H)
    l = lab_ref[...]         # (M, H)
    s = jax.lax.dot_general(p, l, (((1,), (1,)), ((), ())),
                            preferred_element_type=jnp.float32)   # (M, M)
    m = jnp.max(s, axis=-1, keepdims=True)
    lse = m + jnp.log(jnp.sum(jnp.exp(s - m), axis=-1, keepdims=True))
    rows = jax.lax.broadcasted_iota(jnp.int32, s.shape, 0)
    cols = jax.lax.broadcasted_iota(jnp.int32, s.shape, 1)
    diag = jnp.sum(jnp.where(rows == cols, s, 0.0), axis=-1, keepdims=True)
    o_ref[...] = jnp.broadcast_to(jnp.mean(lse - diag), (1, 1))


def masked_block_loss(pred, labels):
    # TODO(synk): masked_sentence_block_loss is not defined in the reference module;
    # implemented as softmax cross-entropy over dot-product similarities with diagonal targets.
    out = _call_full(_block_loss_kernel, jax.ShapeDtypeStruct((1, 1), jnp.float32),
                     pred, labels)
    return out[0, 0]


# --------------------------------------------------------------------------- BERT glue

def init_bert_params(key, cfg, with_mlm=False):
    keys = iter(jax.random.split(key, 256))
    H, I, V, P = cfg["hidden"], cfg["inter"], cfg["vocab"], cfg["max_pos"]

    def nrm(shape):
        return 0.02 * jax.random.normal(next(keys), shape, jnp.float32)

    p = {
        "word_emb": nrm((V, H)),
        "pos_emb": nrm((P, H)),
        "type_emb": nrm((2, H)),
        "emb_ln_g": jnp.ones((H,), jnp.float32),
        "emb_ln_b": jnp.zeros((H,), jnp.float32),
        "layers": [],
    }
    for _ in range(cfg["layers"]):
        lp = {
            "wqkv": nrm((H, 3 * H)), "bqkv": jnp.zeros((3 * H,), jnp.float32),
            "wo": nrm((H, H)), "bo": jnp.zeros((H,), jnp.float32),
            "ln1_g": jnp.ones((H,), jnp.float32), "ln1_b": jnp.zeros((H,), jnp.float32),
            "wi": nrm((H, I)), "bi": jnp.zeros((I,), jnp.float32),
            "wo2": nrm((I, H)), "bo2": jnp.zeros((H,), jnp.float32),
            "ln2_g": jnp.ones((H,), jnp.float32), "ln2_b": jnp.zeros((H,), jnp.float32),
        }
        p["layers"].append(lp)
    if with_mlm:
        p["mlm_w"] = nrm((H, H)); p["mlm_b"] = jnp.zeros((H,), jnp.float32)
        p["mlm_ln_g"] = jnp.ones((H,), jnp.float32)
        p["mlm_ln_b"] = jnp.zeros((H,), jnp.float32)
        p["dec_w"] = nrm((H, V)); p["dec_b"] = jnp.zeros((V,), jnp.float32)
    return p


def sentence_model_forward(params, cfg, input_ids, attention_mask, labels):
    """BertForMaskedLM(..., output_hidden_states=True) equivalent.
    Returns (masked_lm_loss, hidden_states). Prediction scores are never materialized —
    the decoder matmul is fused with the cross-entropy (SmithModel does not use them)."""
    B, S = input_ids.shape
    H = cfg["hidden"]
    emb = (params["word_emb"][input_ids]
           + params["pos_emb"][:S][None, :, :]
           + params["type_emb"][0][None, None, :])
    x = layernorm(emb.reshape(B * S, H), params["emb_ln_g"], params["emb_ln_b"]).reshape(B, S, H)
    hidden_states = [x]
    for lp in params["layers"]:
        x = bert_layer(lp, cfg, x, attention_mask)
        hidden_states.append(x)
    seq = x.reshape(B * S, H)
    h = mlm_transform(seq, params["mlm_w"], params["mlm_b"],
                      params["mlm_ln_g"], params["mlm_ln_b"])
    loss = mlm_decode_loss(h, labels.reshape(B * S, 1), params["dec_w"], params["dec_b"])
    return loss, hidden_states


def document_model_forward(params, cfg, inputs_embeds, attention_mask):
    """Equivalent of BertModel(inputs_embeds=..., attention_mask=...) sequence output."""
    B, S, H = inputs_embeds.shape
    emb = (inputs_embeds
           + params["pos_emb"][:S][None, :, :]
           + params["type_emb"][0][None, None, :])
    x = layernorm(emb.reshape(B * S, H), params["emb_ln_g"], params["emb_ln_b"]).reshape(B, S, H)
    for lp in params["layers"]:
        x = bert_layer(lp, cfg, x, attention_mask)
    return x


def build_doc_inputs(cls_norm, split_idx, hidden):
    """Single static gather instead of a per-document split/pad loop."""
    num_docs = len(split_idx)
    num_blocks = max(split_idx)
    offsets = np.cumsum([0] + list(split_idx))[:-1]
    gather_idx = np.zeros((num_docs, num_blocks), np.int32)
    valid = np.zeros((num_docs, num_blocks, 1), np.float32)
    for i, n in enumerate(split_idx):
        gather_idx[i, :n] = offsets[i] + np.arange(n)
        valid[i, :n, 0] = 1.0
    gathered = jnp.take(cls_norm, jnp.asarray(gather_idx.reshape(-1)), axis=0)
    return gathered.reshape(num_docs, num_blocks, hidden) * jnp.asarray(valid)


def mask_sentence_blocks(doc_inputs, num_masked, split_idx, mask_vec):
    # TODO(synk): mask_sentence_blocks is not defined in the reference module; here we
    # deterministically mask the first `num_masked` blocks of each document.
    num_docs, num_blocks, H = doc_inputs.shape
    labels = doc_inputs[:, :num_masked, :].reshape(-1, H)
    masked = doc_inputs.at[:, :num_masked, :].set(
        jnp.broadcast_to(mask_vec, (num_docs, num_masked, H)))
    mask_indices = np.array([i * num_blocks + j
                             for i in range(num_docs) for j in range(num_masked)],
                            dtype=np.int32)
    return masked, labels, mask_indices


# --------------------------------------------------------------------------- SmithModel

def smith_forward(params, split_idx, input_ids, attention_mask, labels):
    s_cfg, d_cfg = params["sentence_cfg"], params["document_cfg"]
    H = s_cfg["hidden"]

    loss_wp, hidden_states = sentence_model_forward(
        params["sentence"], s_cfg, input_ids, attention_mask, labels)

    cls_sentence = hidden_states[-1][:, 0, :]                      # (num_blocks_total, H)
    cls_sentence_norm = dense_l2norm(cls_sentence, params["dense1_w"], params["dense1_b"])

    offsets = np.cumsum([0] + list(split_idx))
    cls_sentence_norm_split = tuple(
        cls_sentence_norm[int(offsets[i]):int(offsets[i + 1])] for i in range(len(split_idx)))

    doc_inputs = build_doc_inputs(cls_sentence_norm, split_idx, H)

    sb_emb, sb_labels, mask_indices = mask_sentence_blocks(
        doc_inputs, d_cfg["num_masked_blocks"], split_idx, params["mask_vec"])

    # attention mask as in the reference: a block is padding iff every coordinate is exactly 0.
    am = (jnp.sum((sb_emb != 0).astype(jnp.float32), axis=2) > 0).astype(jnp.float32)

    doc_seq = document_model_forward(params["document"], d_cfg, sb_emb, am)
    doc_flat = doc_seq.reshape(-1, d_cfg["hidden"])
    masked_out = doc_flat[mask_indices, :]

    cls_document_norm = dense_l2norm(doc_seq[:, 0, :], params["dense2_w"], params["dense2_b"])

    loss_sp = masked_block_loss(masked_out, sb_labels)
    return (loss_sp, loss_wp, doc_seq, cls_sentence_norm_split, cls_document_norm)


# --------------------------------------------------------------------------------- main

if __name__ == "__main__":
    key = jax.random.PRNGKey(0)
    k_ids, k_sent, k_doc, k_d1, k_d2, k_mask = jax.random.split(key, 6)

    # small shapes (hidden is a multiple of 128 so every store is lane-dense)
    split_idx = [3, 5]                 # sentence blocks per document (2 documents)
    total_blocks = sum(split_idx)      # batch for the sentence transformer = 8
    seq_len = 8
    hidden = 128
    vocab = 512

    sentence_cfg = dict(hidden=hidden, heads=4, inter=256, layers=1, vocab=vocab, max_pos=16)
    document_cfg = dict(hidden=hidden, heads=4, inter=256, layers=1, vocab=vocab, max_pos=16,
                        num_masked_blocks=2)

    input_ids = jax.random.randint(k_ids, (total_blocks, seq_len), 0, vocab, dtype=jnp.int32)
    attention_mask = jnp.ones((total_blocks, seq_len), jnp.float32)
    labels = jnp.full((total_blocks, seq_len), -100, jnp.int32)
    labels = labels.at[:, 2].set(input_ids[:, 2])
    labels = labels.at[:, 5].set(input_ids[:, 5])

    dense1_w = 0.02 * jax.random.normal(k_d1, (hidden, hidden), jnp.float32)
    dense2_w = 0.02 * jax.random.normal(k_d2, (hidden, hidden), jnp.float32)

    params = {
        "sentence_cfg": sentence_cfg,
        "document_cfg": document_cfg,
        "sentence": init_bert_params(k_sent, sentence_cfg, with_mlm=True),
        "document": init_bert_params(k_doc, document_cfg, with_mlm=False),
        "dense1_w": dense1_w, "dense1_b": jnp.zeros((hidden,), jnp.float32),
        "dense2_w": dense2_w, "dense2_b": jnp.zeros((hidden,), jnp.float32),
        "mask_vec": jax.random.normal(k_mask, (hidden,), jnp.float32),
    }

    loss_sp, loss_wp, doc_seq, cls_split, cls_doc_norm = smith_forward(
        params, split_idx, input_ids, attention_mask, labels)

    jax.block_until_ready((loss_sp, loss_wp, doc_seq, cls_doc_norm) + cls_split)
    assert np.isfinite(float(loss_sp)) and np.isfinite(float(loss_wp))
    assert doc_seq.shape == (len(split_idx), max(split_idx), hidden)
    assert cls_doc_norm.shape == (len(split_idx), hidden)
    assert tuple(c.shape for c in cls_split) == ((3, hidden), (5, hidden))
    print("KERNEL_OK")
</pallas_src>

<mosaic_0001>
module attributes {stable_mosaic.version = 11 : i64} {
  func.func @_layernorm_kernel(%arg0: i32, %arg1: memref<64x128xf32, #tpu.memory_space<vmem>>, %arg2: memref<1x128xf32, #tpu.memory_space<vmem>>, %arg3: memref<1x128xf32, #tpu.memory_space<vmem>>, %arg4: memref<64x128xf32, #tpu.memory_space<vmem>>) attributes {dimension_semantics = [#tpu.dimension_semantics<arbitrary>], iteration_bounds = array<i64: 1>, scalar_prefetch = 0 : i64, scratch_operands = 0 : i64, tpu.core_type = #tpu.core_type<tc>, window_params = [{pipeline_mode = #tpu.pipeline_mode<synchronous>, transform_indices = @transform_0, window_bounds = array<i64: 64, 128>}, {pipeline_mode = #tpu.pipeline_mode<synchronous>, transform_indices = @transform_1, window_bounds = array<i64: 1, 128>}, {pipeline_mode = #tpu.pipeline_mode<synchronous>, transform_indices = @transform_2, window_bounds = array<i64: 1, 128>}, {pipeline_mode = #tpu.pipeline_mode<synchronous>, transform_indices = @transform_3, window_bounds = array<i64: 64, 128>}]} {
    %c0 = arith.constant 0 : index
    %c0_0 = arith.constant 0 : index
    %0 = vector.load %arg1[%c0, %c0_0] : memref<64x128xf32, #tpu.memory_space<vmem>>, vector<64x128xf32>
    %c0_1 = arith.constant 0 : index
    %c0_2 = arith.constant 0 : index
    %1 = vector.load %arg2[%c0_1, %c0_2] : memref<1x128xf32, #tpu.memory_space<vmem>>, vector<1x128xf32>
    %c0_3 = arith.constant 0 : index
    %c0_4 = arith.constant 0 : index
    %2 = vector.load %arg3[%c0_3, %c0_4] : memref<1x128xf32, #tpu.memory_space<vmem>>, vector<1x128xf32>
    %cst = arith.constant dense<0.000000e+00> : vector<64xf32>
    %3 = vector.multi_reduction <add>, %0, %cst [1] : vector<64x128xf32> to vector<64xf32>
    %4 = vector.shape_cast %3 : vector<64xf32> to vector<64x1xf32>
    %cst_5 = arith.constant 1.280000e+02 : f32
    %5 = vector.broadcast %cst_5 : f32 to vector<64x1xf32>
    %6 = arith.divf %4, %5 : vector<64x1xf32>
    %7 = vector.broadcast %6 : vector<64x1xf32> to vector<64x128xf32>
    %8 = arith.subf %0, %7 : vector<64x128xf32>
    %9 = arith.mulf %8, %8 : vector<64x128xf32>
    %cst_6 = arith.constant dense<0.000000e+00> : vector<64xf32>
    %10 = vector.multi_reduction <add>, %9, %cst_6 [1] : vector<64x128xf32> to vector<64xf32>
    %11 = vector.shape_cast %10 : vector<64xf32> to vector<64x1xf32>
    %cst_7 = arith.constant 1.280000e+02 : f32
    %12 = vector.broadcast %cst_7 : f32 to vector<64x1xf32>
    %13 = arith.divf %11, %12 : vector<64x1xf32>
    %14 = vector.broadcast %6 : vector<64x1xf32> to vector<64x128xf32>
    %15 = arith.subf %0, %14 : vector<64x128xf32>
    %cst_8 = arith.constant 9.99999996E-13 : f32
    %16 = vector.broadcast %cst_8 : f32 to vector<64x1xf32>
    %17 = arith.addf %13, %16 : vector<64x1xf32>
    %18 = math.rsqrt %17 : vector<64x1xf32>
    %19 = vector.broadcast %18 : vector<64x1xf32> to vector<64x128xf32>
    %20 = arith.mulf %15, %19 : vector<64x128xf32>
    %21 = vector.broadcast %1 : vector<1x128xf32> to vector<64x128xf32>
    %22 = arith.mulf %20, %21 : vector<64x128xf32>
    %23 = vector.broadcast %2 : vector<1x128xf32> to vector<64x128xf32>
    %24 = arith.addf %22, %23 : vector<64x128xf32>
    %c0_9 = arith.constant 0 : index
    %c0_10 = arith.constant 0 : index
    %25 = vector.load %arg4[%c0_9, %c0_10] : memref<64x128xf32, #tpu.memory_space<vmem>>, vector<64x128xf32>
    tpu.vector_store %arg4[%c0_9, %c0_10], %24 {strides = array<i32>} : memref<64x128xf32, #tpu.memory_space<vmem>>, vector<64x128xf32>,
    return
  }
  func.func @transform_0(%arg0: i32) -> (i32, i32) {
    %c0_i32 = arith.constant 0 : i32
    %c0_i32_0 = arith.constant 0 : i32
    %c0_i32_1 = arith.constant 0 : i32
    return %c0_i32, %c0_i32_0 : i32, i32
  }
  func.func @transform_1(%arg0: i32) -> (i32, i32) {
    %c0_i32 = arith.constant 0 : i32
    %c0_i32_0 = arith.constant 0 : i32
    %c0_i32_1 = arith.constant 0 : i32
    return %c0_i32, %c0_i32_0 : i32, i32
  }
  func.func @transform_2(%arg0: i32) -> (i32, i32) {
    %c0_i32 = arith.constant 0 : i32
    %c0_i32_0 = arith.constant 0 : i32
    %c0_i32_1 = arith.constant 0 : i32
    return %c0_i32, %c0_i32_0 : i32, i32
  }
  func.func @transform_3(%arg0: i32) -> (i32, i32) {
    %c0_i32 = arith.constant 0 : i32
    %c0_i32_0 = arith.constant 0 : i32
    %c0_i32_1 = arith.constant 0 : i32
    return %c0_i32, %c0_i32_0 : i32, i32
  }
}

</mosaic_0001>

<bundles_post_ra>
// kernel: tpu_custom_call.1
= control target key start
LH: loop header
LB: loop body
LE: loop exit
PB: predicated region body
PF: predicated region fallthrough
CT: control target
= control target key end

     0   :  { %8 = vsyncpa [#allocation3], 0  ;;  %s529_s0 = inlined_call_operand.hbm [shape: f32[64,128], index: 0, kind: input, shape index: {}]   ;;  %s530_s1 = inlined_call_operand.hbm [shape: f32[1,128], index: 1, kind: input, shape index: {}]   ;;  %s531_s2 = inlined_call_operand.vmem [shape: f32[1,128], index: 2, kind: input, shape index: {}]   ;;  %s532_s3 = inlined_call_operand.hbm [shape: f32[64,128], index: 3, kind: output, shape index: {}]  }
   0x1   :  { %9 = vsyncpa [#allocation6], 0 }
   0x2   :  { %10 = vsyncpa [#allocation4], 0  ;;  %s15_s14 = sshll.u32 %s529_s0, 4  ;;  %s376_s15 = smov [#allocation2]   ;;  %s16_s14 = int_to_ptr.hbm [resolvable:$true] %s15_s14 }
   0x3   :  { %s17_s16 = sshll.u32 %s376_s15, 4  ;;  %s29_s19 = sshll.u32 %s530_s1, 4  ;;  %s18_s16 = int_to_ptr.vmem [resolvable:$true] %s17_s16  ;;  %s30_s19 = int_to_ptr.hbm [resolvable:$true] %s29_s19 }
   0x4   :  { %s377_s20 = smov 128   ;;  %s378_s21 = smov 8  }
   0x5   :  { %23 = dma.hbm_to_vmem [thread:$0]  %s16_s14, 1024, %s18_s16, [#allocation3], %s377_s20, %s377_s20, %s378_s21  }
   0x6   :  { %s379_s22 = smov [#allocation5]  }
   0x7   :  { %s31_s23 = sshll.u32 %s379_s22, 4  ;;  %s32_s23 = int_to_ptr.vmem [resolvable:$true] %s31_s23 }
   0x8   :  { %34 = dma.hbm_to_vmem [thread:$0]  %s30_s19, 16, %s32_s23, [#allocation6]  }
   0x9   :  { %370 = dma.done.wait [#allocation3], 1024  }
   0xa   :  { %371 = vsyncadd [#allocation3], 4294966272 }
   0xb   :  { %372 = dma.done.wait [#allocation6], 16  }
   0xc   :  { %373 = vsyncadd [#allocation6], 4294967280  ;;  %v49_v0 = vld [vmem:[#allocation2 + $0x20] sm:$0xff]  ;;  %v47_v1 = vld [vmem:[#allocation2 + $0x10] sm:$0xff]  ;;  %v380_v8 = vmov 128.0   ;;  %s258_s27 = sshll.u32 %s532_s3, 4  ;;  %s259_s27 = int_to_ptr.hbm [resolvable:$true] %s258_s27 }
   0xd   :  { %v45_v2 = vld [vmem:[#allocation2] sm:$0xff]  ;;  %63 = vadd.xlane.f32.xlu2 %v49_v0  ;;  %59 = vadd.xlane.f32.xlu1 %v47_v1  ;;  %v50_v3 = vld [vmem:[#allocation2 + $0x28] sm:$0xff]  ;;  %v48_v4 = vld [vmem:[#allocation2 + $0x18] sm:$0xff]  ;;  %280 = vrcp.f32 %v380_v8 }
   0xe   :  { %55 = vadd.xlane.f32.xlu0 %v45_v2  ;;  %v46_v5 = vld [vmem:[#allocation2 + $0x8] sm:$0xff]  ;;  %v52_v6 = vld [vmem:[#allocation2 + $0x38] sm:$0xff]  ;;  %v51_v7 = vld [vmem:[#allocation2 + $0x30] sm:$0xff] }
  0x13   :  { %v281_v9 = vpop.eup %280 }
  0x14   :  { %v72_v10 = vmul.f32 128.0, %v281_v9  ;;  %vm76_vm0 = vweird.f32 %v281_v9 }
  0x15   :  { %65 = vadd.xlane.f32.xlu2 %v50_v3  ;;  %61 = vadd.xlane.f32.xlu1 %v48_v4 }
  0x16   :  { %57 = vadd.xlane.f32.xlu0 %v46_v5  ;;  %v73_v11 = vsub.f32 1.0, %v72_v10 }
  0x18   :  { %v74_v12 = vmul.f32 %v281_v9, %v73_v11 }
  0x1a   :  { %v75_v13 = vadd.f32 %v281_v9, %v74_v12 }
  0x1c   :  { %v411_v14 = vsel %vm76_vm0, %v281_v9, %v75_v13 }
  0x1d   :  { %69 = vadd.xlane.f32.xlu1 %v52_v6 }
  0x1e   :  { %67 = vadd.xlane.f32.xlu0 %v51_v7 }
  0x80   :  { %v64_v15 = vpop.xlane.xlu2 %63  ;;  %v60_v16 = vpop.xlane.xlu1 %59 }
  0x81   :  { %v80_v17 = vmul.f32 %v411_v14, %v60_v16  ;;  %v56_v18 = vpop.xlane.xlu0 %55  ;;  %v82_v32 = vmul.f32 %v411_v14, %v64_v15 }
  0x82   :  { %v78_v19 = vmul.f32 %v411_v14, %v56_v18 }
  0x83   :  { %v415_v20 = vsub.f32 %v47_v1, %v80_v17  ;;  %v439_v37 = vsub.f32 %v49_v0, %v82_v32 }
  0x84   :  { %v417_v21 = vsub.f32 %v45_v2, %v78_v19  ;;  %v468_v19 = vld [vmem:[#allocation5] ss:$0 sm:$0xff] }
  0x85   :  { %v96_v22 = vmul.f32 %v415_v20, %v415_v20  ;;  %v98_v42 = vmul.f32 %v439_v37, %v439_v37 }
  0x86   :  { %v94_v23 = vmul.f32 %v417_v21, %v417_v21 }
  0x87   :  { %106 = vadd.xlane.f32.xlu1 %v96_v22 }
  0x88   :  { %102 = vadd.xlane.f32.xlu2 %v94_v23  ;;  %v66_v24 = vpop.xlane.xlu2 %65  ;;  %v62_v25 = vpop.xlane.xlu1 %61 }
  0x89   :  { %v83_v26 = vmul.f32 %v411_v14, %v66_v24  ;;  %v81_v27 = vmul.f32 %v411_v14, %v62_v25  ;;  %v58_v28 = vpop.xlane.xlu0 %57 }
  0x8a   :  { %v79_v29 = vmul.f32 %v411_v14, %v58_v28  ;;  %v478_v28 = vld [vmem:[%s531_s2] ss:$0 sm:$0xff]  ;;  %s381_s2 = smov [#allocation7]  }
  0x8b   :  { %v426_v30 = vsub.f32 %v50_v3, %v83_v26  ;;  %v428_v31 = vsub.f32 %v48_v4, %v81_v27  ;;  %s256_s24 = sshll.u32 %s381_s2, 4  ;;  %s257_s24 = int_to_ptr.vmem [resolvable:$true] %s256_s24 }
  0x8c   :  { %v431_v33 = vsub.f32 %v46_v5, %v79_v29 }
  0x8d   :  { %v99_v34 = vmul.f32 %v426_v30, %v426_v30  ;;  %v97_v35 = vmul.f32 %v428_v31, %v428_v31 }
  0x8e   :  { %v95_v36 = vmul.f32 %v431_v33, %v431_v33 }
  0x8f   :  { %112 = vadd.xlane.f32.xlu1 %v99_v34 }
  0x90   :  { %108 = vadd.xlane.f32.xlu2 %v97_v35  ;;  %104 = vadd.xlane.f32.xlu0 %v95_v36  ;;  %v70_v39 = vpop.xlane.xlu1 %69 }
  0x91   :  { %v68_v38 = vpop.xlane.xlu0 %67  ;;  %v85_v43 = vmul.f32 %v411_v14, %v70_v39 }
  0x92   :  { %v84_v40 = vmul.f32 %v411_v14, %v68_v38 }
  0x93   :  { %v449_v45 = vsub.f32 %v52_v6, %v85_v43 }
  0x94   :  { %v442_v41 = vsub.f32 %v51_v7, %v84_v40 }
  0x95   :  { %v101_v46 = vmul.f32 %v449_v45, %v449_v45 }
  0x96   :  { %v100_v44 = vmul.f32 %v442_v41, %v442_v41 }
  0x98   :  { %110 = vadd.xlane.f32.xlu0 %v98_v42  ;;  %114 = vadd.xlane.f32.xlu2 %v100_v44 }
  0xa0   :  { %116 = vadd.xlane.f32.xlu0 %v101_v46 }
  0xfa   :  { %v107_v47 = vpop.xlane.xlu1 %106 }
  0xfb   :  { %v120_v48 = vmul.f32 %v107_v47, %v411_v14  ;;  %v103_v49 = vpop.xlane.xlu2 %102 }
  0xfc   :  { %v118_v50 = vmul.f32 %v103_v49, %v411_v14 }
  0xfd   :  { %v128_v51 = vadd.f32 1e-12, %v120_v48 }
  0xfe   :  { %v126_v52 = vadd.f32 1e-12, %v118_v50 }
  0xff   :  { %282 = vrsqrt.f32 %v128_v51  ;;  %vm160_vm1 = vweird.f32 %v128_v51 }
 0x100   :  { %284 = vrsqrt.f32 %v126_v52  ;;  %vm140_vm5 = vweird.f32 %v126_v52 }
 0x102   :  { %v113_v53 = vpop.xlane.xlu1 %112 }
 0x103   :  { %v123_v54 = vmul.f32 %v113_v53, %v411_v14  ;;  %v109_v55 = vpop.xlane.xlu2 %108  ;;  %v105_v56 = vpop.xlane.xlu0 %104 }
 0x104   :  { %v121_v57 = vmul.f32 %v109_v55, %v411_v14  ;;  %v119_v58 = vmul.f32 %v105_v56, %v411_v14 }
 0x105   :  { %v283_v59 = vpop.eup %282  ;;  %v131_v60 = vadd.f32 1e-12, %v123_v54 }
 0x106   :  { %v285_v61 = vpop.eup %284  ;;  %v155_v62 = vmul.f32 %v283_v59, %v128_v51  ;;  %v458_v63 = vadd.f32 1e-12, %v121_v57  ;;  %v460_v0 = vadd.f32 1e-12, %v119_v58  ;;  %vm161_vm2 = vweird.f32 %v283_v59 }
 0x107   :  { %v135_v1 = vmul.f32 %v285_v61, %v126_v52  ;;  %286 = vrsqrt.f32 %v131_v60  ;;  %vm141_vm3 = vweird.f32 %v285_v61  ;;  %vm162_vm4 = vmor %vm160_vm1, %vm161_vm2  ;;  %vm190_vm7 = vweird.f32 %v131_v60 }
 0x108   :  { %v156_v2 = vmul.f32 %v283_v59, %v155_v62  ;;  %288 = vrsqrt.f32 %v458_v63  ;;  %vm142_vm6 = vmor %vm140_vm5, %vm141_vm3  ;;  %vm170_vm9 = vweird.f32 %v458_v63  ;;  %vm150_vm14 = vweird.f32 %v460_v0 }
 0x109   :  { %v136_v3 = vmul.f32 %v285_v61, %v135_v1  ;;  %290 = vrsqrt.f32 %v460_v0 }
 0x10a   :  { %v157_v4 = vmul.f32 0.5, %v156_v2 }
 0x10b   :  { %v137_v5 = vmul.f32 0.5, %v136_v3  ;;  %v115_v6 = vpop.xlane.xlu2 %114  ;;  %v111_v7 = vpop.xlane.xlu0 %110 }
 0x10c   :  { %v158_v8 = vsub.f32 1.5, %v157_v4  ;;  %v124_v9 = vmul.f32 %v115_v6, %v411_v14  ;;  %v122_v10 = vmul.f32 %v111_v7, %v411_v14 }
 0x10d   :  { %v287_v11 = vpop.eup %286  ;;  %v138_v12 = vsub.f32 1.5, %v137_v5 }
 0x10e   :  { %v289_v13 = vpop.eup %288  ;;  %v159_v15 = vmul.f32 %v283_v59, %v158_v8  ;;  %v185_v16 = vmul.f32 %v287_v11, %v131_v60  ;;  %v466_v17 = vadd.f32 1e-12, %v124_v9  ;;  %v472_v24 = vadd.f32 1e-12, %v122_v10 }
 0x10f   :  { %v291_v18 = vpop.eup %290  ;;  %v139_v22 = vmul.f32 %v285_v61, %v138_v12  ;;  %v165_v23 = vmul.f32 %v289_v13, %v458_v63  ;;  %vm191_vm8 = vweird.f32 %v287_v11  ;;  %vm171_vm11 = vweird.f32 %v289_v13 }
 0x110   :  { %v163_v25 = vsel %vm162_vm4, %v283_v59, %v159_v15  ;;  %v186_v26 = vmul.f32 %v287_v11, %v185_v16  ;;  %v145_v27 = vmul.f32 %v291_v18, %v460_v0  ;;  %292 = vrsqrt.f32 %v466_v17  ;;  %vm490_vm10 = vmor %vm190_vm7, %vm191_vm8 }
 0x111   :  { %v216_v29 = vmul.f32 %v163_v25, %v415_v20  ;;  %v143_v32 = vsel %vm142_vm6, %v285_v61, %v139_v22  ;;  %v166_v34 = vmul.f32 %v289_v13, %v165_v23  ;;  %294 = vrsqrt.f32 %v472_v24  ;;  %vm172_vm13 = vmor %vm170_vm9, %vm171_vm11 }
 0x112   :  { %v214_v35 = vmul.f32 %v143_v32, %v417_v21  ;;  %v187_v36 = vmul.f32 0.5, %v186_v26  ;;  %v146_v38 = vmul.f32 %v291_v18, %v145_v27  ;;  %vm151_vm12 = vweird.f32 %v291_v18 }
 0x113   :  { %v227_v39 = vmul.f32 %v468_v19, %v216_v29  ;;  %v167_v40 = vmul.f32 0.5, %v166_v34  ;;  %v117_v42 = vpop.xlane.xlu0 %116  ;;  %vm152_vm15 = vmor %vm150_vm14, %vm151_vm12  ;;  %vm200_vm0 = vweird.f32 %v466_v17  ;;  %vm180_vm4 = vweird.f32 %v472_v24 }
 0x114   :  { %v225_v43 = vmul.f32 %v468_v19, %v214_v35  ;;  %v188_v20 = vsub.f32 1.5, %v187_v36  ;;  %v147_v44 = vmul.f32 0.5, %v146_v38  ;;  %v125_v46 = vmul.f32 %v117_v42, %v411_v14 }
 0x115   :  { %v238_v47 = vadd.f32 %v478_v28, %v227_v39  ;;  %v168_v48 = vsub.f32 1.5, %v167_v40 }
 0x116   :  { %v236_v49 = vadd.f32 %v478_v28, %v225_v43  ;;  %v189_v50 = vmul.f32 %v287_v11, %v188_v20  ;;  %v148_v51 = vsub.f32 1.5, %v147_v44  ;;  %v133_v52 = vadd.f32 1e-12, %v125_v46  ;;  %v293_v53 = vpop.eup %292 }
 0x117   :  { %246 = vst [vmem:[#allocation7 + $0x10] sm:$0xff] %v238_v47  ;;  %v169_v54 = vmul.f32 %v289_v13, %v168_v48  ;;  %v195_v56 = vmul.f32 %v293_v53, %v466_v17  ;;  %v295_v57 = vpop.eup %294  ;;  %vm201_vm1 = vweird.f32 %v293_v53 }
 0x118   :  { %244 = vst [vmem:[#allocation7] sm:$0xff] %v236_v49  ;;  %v193_v14 = vsel %vm490_vm10, %v287_v11, %v189_v50  ;;  %v149_v55 = vmul.f32 %v291_v18, %v148_v51  ;;  %296 = vrsqrt.f32 %v133_v52  ;;  %v175_v1 = vmul.f32 %v295_v57, %v472_v24  ;;  %vm202_vm3 = vmor %vm200_vm0, %vm201_vm1 }
 0x119   :  { %v219_v58 = vmul.f32 %v193_v14, %v426_v30  ;;  %v173_v59 = vsel %vm172_vm13, %v289_v13, %v169_v54  ;;  %v196_v62 = vmul.f32 %v293_v53, %v195_v56  ;;  %vm181_vm2 = vweird.f32 %v295_v57 }
 0x11a   :  { %v217_v60 = vmul.f32 %v173_v59, %v428_v31  ;;  %v153_v61 = vsel %vm152_vm15, %v291_v18, %v149_v55  ;;  %v176_v4 = vmul.f32 %v295_v57, %v175_v1  ;;  %vm182_vm5 = vmor %vm180_vm4, %vm181_vm2  ;;  %vm210_vm7 = vweird.f32 %v133_v52 }
 0x11b   :  { %v230_v63 = vmul.f32 %v468_v19, %v219_v58  ;;  %v215_v2 = vmul.f32 %v153_v61, %v431_v33  ;;  %v197_v3 = vmul.f32 0.5, %v196_v62 }
 0x11c   :  { %v228_v0 = vmul.f32 %v468_v19, %v217_v60  ;;  %v177_v7 = vmul.f32 0.5, %v176_v4 }
 0x11d   :  { %v241_v30 = vadd.f32 %v478_v28, %v230_v63  ;;  %v226_v5 = vmul.f32 %v468_v19, %v215_v2  ;;  %v198_v6 = vsub.f32 1.5, %v197_v3 }
 0x11e   :  { %v239_v31 = vadd.f32 %v478_v28, %v228_v0  ;;  %v297_v8 = vpop.eup %296  ;;  %v178_v10 = vsub.f32 1.5, %v177_v7 }
 0x11f   :  { %249 = vst [vmem:[#allocation7 + $0x28] sm:$0xff] %v241_v30  ;;  %v237_v9 = vadd.f32 %v478_v28, %v226_v5  ;;  %v199_v33 = vmul.f32 %v293_v53, %v198_v6  ;;  %v205_v11 = vmul.f32 %v297_v8, %v133_v52  ;;  %vm211_vm6 = vweird.f32 %v297_v8 }
 0x120   :  { %247 = vst [vmem:[#allocation7 + $0x18] sm:$0xff] %v239_v31  ;;  %v179_v13 = vmul.f32 %v295_v57, %v178_v10  ;;  %vm212_vm8 = vmor %vm210_vm7, %vm211_vm6 }
 0x121   :  { %245 = vst [vmem:[#allocation7 + $0x8] sm:$0xff] %v237_v9  ;;  %v203_v12 = vsel %vm202_vm3, %v293_v53, %v199_v33  ;;  %v206_v15 = vmul.f32 %v297_v8, %v205_v11 }
 0x122   :  { %v220_v16 = vmul.f32 %v203_v12, %v442_v41  ;;  %v183_v17 = vsel %vm182_vm5, %v295_v57, %v179_v13 }
 0x123   :  { %v207_v18 = vmul.f32 0.5, %v206_v15  ;;  %v218_v23 = vmul.f32 %v183_v17, %v439_v37 }
 0x124   :  { %v231_v22 = vmul.f32 %v468_v19, %v220_v16 }
 0x125   :  { %v208_v25 = vsub.f32 1.5, %v207_v18  ;;  %v229_v27 = vmul.f32 %v468_v19, %v218_v23 }
 0x126   :  { %v242_v26 = vadd.f32 %v478_v28, %v231_v22 }
 0x127   :  { %v209_v29 = vmul.f32 %v297_v8, %v208_v25  ;;  %v240_v24 = vadd.f32 %v478_v28, %v229_v27 }
 0x128   :  { %250 = vst [vmem:[#allocation7 + $0x30] sm:$0xff] %v242_v26 }
 0x129   :  { %v213_v41 = vsel %vm212_vm8, %v297_v8, %v209_v29  ;;  %248 = vst [vmem:[#allocation7 + $0x20] sm:$0xff] %v240_v24 }
 0x12a   :  { %v221_v32 = vmul.f32 %v213_v41, %v449_v45 }
 0x12c   :  { %v232_v37 = vmul.f32 %v468_v19, %v221_v32 }
 0x12e   :  { %v243_v34 = vadd.f32 %v478_v28, %v232_v37 }
 0x130   :  { %251 = vst [vmem:[#allocation7 + $0x38] sm:$0xff] %v243_v34 }
 0x131   :  { %264 = dma.vmem_to_hbm [thread:$0]  %s257_s24, 1024, %s259_s27, [#allocation4], %s377_s20, %s377_s20, %s378_s21  }
 0x132   :  { %374 = dma.done.wait [#allocation4], 1024  }
 0x133   :  { %375 = vsyncadd [#allocation4], 4294966272 }
 0x134   :  { %269 = vsyncpa [#allocation3], 1 }
 0x135   :  { %270 = vsyncpa [#allocation6], 1 }
 0x136   :  { %271 = vsyncpa [#allocation4], 1 }

</bundles_post_ra>
